<compile_context>
chip_gen: v7x
topology: tpu7x:2x2x1
jax: 0.10.0
libtpu: 0.0.40
codegen_flags: <defaults>
</compile_context>

<pallas_src>
import jax
import jax.numpy as jnp
from jax import lax
from jax.experimental import pallas as pl
from jax.experimental.pallas import tpu as pltpu


# ----------------------------- Pallas kernel -------------------------------


def _moe_kernel(eid_ref, na_ref, x_ref, w1_ref, w3_ref, w2_ref, cw_ref,
                o_ref, acc_ref):
    """Grid = (token_tile, expert_slot, intermediate_tile).

    eid_ref : SMEM (nT, E) int32 -- active expert ids first, then the last
              active id repeated (so the weight index_map repeats -> no DMA).
    na_ref  : SMEM (nT,)  int32 -- number of active experts per token tile.
    """
    t = pl.program_id(0)
    e = pl.program_id(1)
    i = pl.program_id(2)
    n_e = pl.num_programs(1)
    n_i = pl.num_programs(2)

    @pl.when((e == 0) & (i == 0))
    def _init():
        acc_ref[...] = jnp.zeros_like(acc_ref)

    @pl.when(e < na_ref[t])
    def _compute():
        x = x_ref[...].astype(jnp.bfloat16)          # (tm, H)
        w1 = w1_ref[0].astype(jnp.bfloat16)          # (ti, H)
        w3 = w3_ref[0].astype(jnp.bfloat16)          # (ti, H)
        w2 = w2_ref[0].astype(jnp.bfloat16)          # (H, ti)

        # Contract on the last dims directly -- no transposes materialized.
        dn = (((1,), (1,)), ((), ()))
        g = lax.dot_general(x, w1, dn, preferred_element_type=jnp.float32)
        u = lax.dot_general(x, w3, dn, preferred_element_type=jnp.float32)
        h = (g * jax.nn.sigmoid(g)) * u              # SiLU(g) * u, f32
        part = lax.dot_general(h.astype(jnp.bfloat16), w2, dn,
                               preferred_element_type=jnp.float32)  # (tm, H)

        # Select this expert's combine-weight column from the resident
        # lane-dense (tm, E) tile with an iota mask.
        eid = eid_ref[t, e]
        lanes = lax.broadcasted_iota(jnp.int32, cw_ref.shape, 1)
        w = jnp.sum(jnp.where(lanes == eid, cw_ref[...], 0.0),
                    axis=1, keepdims=True)           # (tm, 1)

        acc_ref[...] += part * w

    @pl.when((e == n_e - 1) & (i == n_i - 1))
    def _finalize():
        o_ref[...] = acc_ref[...].astype(o_ref.dtype)


def moe_experts(x, w1, w3, w2, cw, expert_ids, n_active, *, tm, ti,
                e_active_hint=None):
    """x:(T,H) f32; w1/w3:(E,I,H) bf16; w2:(E,H,I) bf16; cw:(T,E) f32;
    expert_ids:(nT,E) i32; n_active:(nT,) i32  ->  (T,H) f32."""
    T, H = x.shape
    E, I, _ = w1.shape
    assert T % tm == 0 and I % ti == 0
    nT, nI = T // tm, I // ti
    if e_active_hint is None:
        e_active_hint = E

    # --- index maps (scalar-prefetch refs arrive as trailing positional args)
    def x_map(t, e, i, eid, na):
        return (t, 0)

    def cw_map(t, e, i, eid, na):
        return (t, 0)

    def out_map(t, e, i, eid, na):
        return (t, 0)

    def w13_map(t, e, i, eid, na):
        # Inactive slots pin to the previously-loaded block -> DMA is skipped.
        return (eid[t, e], jnp.where(e < na[t], i, nI - 1), 0)

    def w2_map(t, e, i, eid, na):
        return (eid[t, e], 0, jnp.where(e < na[t], i, nI - 1))

    wbytes = w1.dtype.itemsize
    cost = pl.CostEstimate(
        flops=int(6 * H * I * tm * e_active_hint * nT),
        transcendentals=int(tm * I * e_active_hint * nT),
        bytes_accessed=int(nT * e_active_hint * 3 * H * I * wbytes
                           + 2 * T * H * 4 + T * E * 4),
    )

    return pl.pallas_call(
        _moe_kernel,
        out_shape=jax.ShapeDtypeStruct((T, H), jnp.float32),
        grid_spec=pltpu.PrefetchScalarGridSpec(
            num_scalar_prefetch=2,
            grid=(nT, E, nI),
            in_specs=[
                pl.BlockSpec((tm, H), x_map),        # resident per token tile
                pl.BlockSpec((1, ti, H), w13_map),   # w1 tile
                pl.BlockSpec((1, ti, H), w13_map),   # w3 tile
                pl.BlockSpec((1, H, ti), w2_map),    # w2 tile
                pl.BlockSpec((tm, E), cw_map),       # resident combine weights
            ],
            out_specs=pl.BlockSpec((tm, H), out_map),
            scratch_shapes=[pltpu.VMEM((tm, H), jnp.float32)],
        ),
        compiler_params=pltpu.CompilerParams(
            dimension_semantics=("parallel", "arbitrary", "arbitrary"),
            vmem_limit_bytes=48 * 1024 * 1024,   # safe on v7x (64 MiB), big on v5e/v6e
        ),
        cost_estimate=cost,
    )(expert_ids, n_active, x, w1, w3, w2, cw)


# ------------------------------ MoE module ---------------------------------


class Deepseekv2MoEPallas:
    def __init__(self, n_routed_experts, num_experts_per_tok, hidden_size,
                 intermediate_size, key):
        self.num_total_experts = n_routed_experts
        self.top_k = num_experts_per_tok
        self.n_routed_experts = n_routed_experts
        self.n_group = 8
        self.topk_group = 3
        k0, k1, k2, k3 = jax.random.split(key, 4)
        # torch.rand -> uniform[0,1).  Gate stays f32 (tiny); expert weights are
        # stored bf16 (halves HBM traffic, MXU-native on v5e/v6e/v7x).
        self.gate_weight = jax.random.uniform(
            k0, (n_routed_experts, hidden_size), jnp.float32)
        self.w1_weight = jax.random.uniform(
            k1, (n_routed_experts, intermediate_size, hidden_size),
            jnp.float32).astype(jnp.bfloat16)
        self.w3_weight = jax.random.uniform(
            k2, (n_routed_experts, intermediate_size, hidden_size),
            jnp.float32).astype(jnp.bfloat16)
        self.w2_weight = jax.random.uniform(
            k3, (n_routed_experts, hidden_size, intermediate_size),
            jnp.float32).astype(jnp.bfloat16)

    # --- grouped top-k routing (exactly mirrors the PyTorch forward) ---------
    def _routing(self, router_logits):
        T, E = router_logits.shape
        scores = jax.nn.softmax(router_logits.astype(jnp.float32), axis=-1)
        group_scores = scores.reshape(T, self.n_group, -1).max(axis=-1)
        _, group_idx = lax.top_k(group_scores, self.topk_group)
        group_mask = jax.nn.one_hot(group_idx, self.n_group,
                                    dtype=jnp.float32).sum(axis=1)
        score_mask = jnp.repeat(group_mask, E // self.n_group, axis=1)
        tmp_scores = jnp.where(score_mask > 0, scores, 0.0)
        routing_weights, selected = lax.top_k(tmp_scores, self.top_k)
        # Dense combine weights: cw[t,e] = routing weight if expert e selected
        # for token t else 0 (exactly what index_add_ with *weight achieves).
        cw = (jax.nn.one_hot(selected, E, dtype=jnp.float32)
              * routing_weights[..., None]).sum(axis=1)
        return cw, selected

    # --- per-token-tile active-expert schedule for scalar prefetch ----------
    def _expert_schedule(self, selected, nT, tm):
        E = self.num_total_experts
        tok_mask = jax.nn.one_hot(selected, E, dtype=jnp.int32).sum(axis=1) > 0
        tile_mask = tok_mask.reshape(nT, tm, E).any(axis=1)           # (nT, E)
        ids = jnp.arange(E, dtype=jnp.int32)[None, :]
        order = jnp.argsort(
            jnp.where(tile_mask, ids, ids + E), axis=1).astype(jnp.int32)
        n_active = tile_mask.sum(axis=1).astype(jnp.int32)            # (nT,)
        last = jnp.take_along_axis(
            order, jnp.maximum(n_active - 1, 0)[:, None], axis=1)     # (nT,1)
        expert_ids = jnp.where(ids < n_active[:, None], order,
                               last).astype(jnp.int32)                # (nT,E)
        return expert_ids, n_active

    def __call__(self, hidden_states, tm=8, ti=128):
        T, H = hidden_states.shape
        E = self.num_total_experts
        # Router GEMM is tiny -> plain XLA (review item: drop gate Pallas kernel).
        router_logits = hidden_states @ self.gate_weight.T
        cw, selected = self._routing(router_logits)                   # (T,E)
        nT = T // tm
        expert_ids, n_active = self._expert_schedule(selected, nT, tm)
        out = moe_experts(hidden_states, self.w1_weight, self.w3_weight,
                          self.w2_weight, cw, expert_ids, n_active,
                          tm=tm, ti=ti,
                          e_active_hint=min(E, tm * self.top_k))
        return out.reshape(T, H)

    # Pure-JAX reference (dense expert loop, same bf16 casts) for checking.
    def reference(self, hidden_states):
        T, H = hidden_states.shape
        logits = hidden_states @ self.gate_weight.T
        cw, _ = self._routing(logits)
        xb = hidden_states.astype(jnp.bfloat16)
        dn = (((1,), (1,)), ((), ()))
        final = jnp.zeros((T, H), jnp.float32)
        for e in range(self.num_total_experts):
            g = lax.dot_general(xb, self.w1_weight[e], dn,
                                preferred_element_type=jnp.float32)
            u = lax.dot_general(xb, self.w3_weight[e], dn,
                                preferred_element_type=jnp.float32)
            h = (g * jax.nn.sigmoid(g)) * u
            out_e = lax.dot_general(h.astype(jnp.bfloat16), self.w2_weight[e],
                                    dn, preferred_element_type=jnp.float32)
            final = final + out_e * cw[:, e:e + 1]
        return final


if __name__ == "__main__":
    key = jax.random.PRNGKey(0)
    k_w, k_x = jax.random.split(key)

    # Small but lane-aligned shapes (H, I multiples of 128; tm multiple of 8).
    n_routed_experts = 16        # divisible by n_group=8
    num_experts_per_tok = 2
    hidden_size = 128
    intermediate_size = 256
    num_tokens = 16

    moe = Deepseekv2MoEPallas(n_routed_experts, num_experts_per_tok,
                              hidden_size, intermediate_size, k_w)

    hidden_states = jax.random.uniform(
        k_x, (num_tokens, hidden_size), jnp.float32)

    out = moe(hidden_states)
    out = jax.block_until_ready(out)

    ref = moe.reference(hidden_states)
    assert out.shape == (num_tokens, hidden_size)
    rel_err = float(jnp.max(jnp.abs(out - ref))
                    / (jnp.max(jnp.abs(ref)) + 1e-6))
    assert rel_err < 1e-2, rel_err

    print("KERNEL_OK")
</pallas_src>

<mosaic_0001>
module attributes {stable_mosaic.version = 11 : i64} {
  func.func @_moe_kernel(%arg0: i32, %arg1: i32, %arg2: i32, %arg3: memref<2x16xi32, #tpu.memory_space<smem>>, %arg4: memref<2xi32, #tpu.memory_space<smem>>, %arg5: memref<8x128xf32, #tpu.memory_space<vmem>>, %arg6: memref<1x128x128xbf16, #tpu.memory_space<vmem>>, %arg7: memref<1x128x128xbf16, #tpu.memory_space<vmem>>, %arg8: memref<1x128x128xbf16, #tpu.memory_space<vmem>>, %arg9: memref<8x16xf32, #tpu.memory_space<vmem>>, %arg10: memref<8x128xf32, #tpu.memory_space<vmem>>, %arg11: memref<8x128xf32, #tpu.memory_space<vmem>>) attributes {dimension_semantics = [#tpu.dimension_semantics<parallel>, #tpu.dimension_semantics<arbitrary>, #tpu.dimension_semantics<arbitrary>], iteration_bounds = array<i64: 2, 16, 2>, scalar_prefetch = 2 : i64, scratch_operands = 1 : i64, tpu.core_type = #tpu.core_type<tc>, window_params = [{transform_indices = @transform_0, window_bounds = array<i64: 8, 128>}, {transform_indices = @transform_1, window_bounds = array<i64: 1, 128, 128>}, {transform_indices = @transform_2, window_bounds = array<i64: 1, 128, 128>}, {transform_indices = @transform_3, window_bounds = array<i64: 1, 128, 128>}, {transform_indices = @transform_4, window_bounds = array<i64: 8, 16>}, {transform_indices = @transform_5, window_bounds = array<i64: 8, 128>}]} {
    %c0_i32 = arith.constant 0 : i32
    %0 = arith.cmpi eq, %arg1, %c0_i32 : i32
    %c0_i32_0 = arith.constant 0 : i32
    %1 = arith.cmpi eq, %arg2, %c0_i32_0 : i32
    %2 = arith.andi %0, %1 : i1
    %3 = arith.extui %2 : i1 to i32
    %c0_i32_1 = arith.constant 0 : i32
    %4 = arith.cmpi ne, %3, %c0_i32_1 : i32
    scf.if %4 {
      %cst = arith.constant 0.000000e+00 : f32
      %15 = vector.broadcast %cst : f32 to vector<8x128xf32>
      %c0 = arith.constant 0 : index
      %c0_4 = arith.constant 0 : index
      %16 = vector.load %arg11[%c0, %c0_4] : memref<8x128xf32, #tpu.memory_space<vmem>>, vector<8x128xf32>
      tpu.vector_store %arg11[%c0, %c0_4], %15 {strides = array<i32>} : memref<8x128xf32, #tpu.memory_space<vmem>>, vector<8x128xf32>,
    } else {
    }
    %5 = arith.index_cast %arg0 : i32 to index
    %6 = memref.load %arg4[%5] : memref<2xi32, #tpu.memory_space<smem>>
    %7 = arith.cmpi slt, %arg1, %6 : i32
    %8 = arith.extui %7 : i1 to i32
    %c0_i32_2 = arith.constant 0 : i32
    %9 = arith.cmpi ne, %8, %c0_i32_2 : i32
    scf.if %9 {
      %c0 = arith.constant 0 : index
      %c0_4 = arith.constant 0 : index
      %15 = vector.load %arg5[%c0, %c0_4] : memref<8x128xf32, #tpu.memory_space<vmem>>, vector<8x128xf32>
      %16 = arith.truncf %15 : vector<8x128xf32> to vector<8x128xbf16>
      %c0_5 = arith.constant 0 : index
      %c0_6 = arith.constant 0 : index
      %c0_7 = arith.constant 0 : index
      %17 = vector.load %arg6[%c0_5, %c0_6, %c0_7] : memref<1x128x128xbf16, #tpu.memory_space<vmem>>, vector<1x128x128xbf16>
      %18 = vector.shape_cast %17 : vector<1x128x128xbf16> to vector<128x128xbf16>
      %c0_8 = arith.constant 0 : index
      %c0_9 = arith.constant 0 : index
      %c0_10 = arith.constant 0 : index
      %19 = vector.load %arg7[%c0_8, %c0_9, %c0_10] : memref<1x128x128xbf16, #tpu.memory_space<vmem>>, vector<1x128x128xbf16>
      %20 = vector.shape_cast %19 : vector<1x128x128xbf16> to vector<128x128xbf16>
      %c0_11 = arith.constant 0 : index
      %c0_12 = arith.constant 0 : index
      %c0_13 = arith.constant 0 : index
      %21 = vector.load %arg8[%c0_11, %c0_12, %c0_13] : memref<1x128x128xbf16, #tpu.memory_space<vmem>>, vector<1x128x128xbf16>
      %22 = vector.shape_cast %21 : vector<1x128x128xbf16> to vector<128x128xbf16>
      %cst = arith.constant dense<0.000000e+00> : vector<8x128xf32>
      %23 = tpu.matmul %16, %18, %cst {dimension_numbers = #tpu.dot_dimension_numbers<[1], [1], [0], [0], [0, 0, 1, 0], [], []>} : vector<8x128xbf16>, vector<128x128xbf16>, vector<8x128xf32> -> vector<8x128xf32>
      %cst_14 = arith.constant dense<0.000000e+00> : vector<8x128xf32>
      %24 = tpu.matmul %16, %20, %cst_14 {dimension_numbers = #tpu.dot_dimension_numbers<[1], [1], [0], [0], [0, 0, 1, 0], [], []>} : vector<8x128xbf16>, vector<128x128xbf16>, vector<8x128xf32> -> vector<8x128xf32>
      %25 = arith.negf %23 : vector<8x128xf32>
      %26 = math.exp %25 : vector<8x128xf32>
      %cst_15 = arith.constant 1.000000e+00 : f32
      %27 = vector.broadcast %cst_15 : f32 to vector<8x128xf32>
      %28 = arith.addf %27, %26 : vector<8x128xf32>
      %29 = arith.divf %27, %28 : vector<8x128xf32>
      %30 = arith.mulf %23, %29 : vector<8x128xf32>
      %31 = arith.mulf %30, %24 : vector<8x128xf32>
      %32 = arith.truncf %31 : vector<8x128xf32> to vector<8x128xbf16>
      %cst_16 = arith.constant dense<0.000000e+00> : vector<8x128xf32>
      %33 = tpu.matmul %32, %22, %cst_16 {dimension_numbers = #tpu.dot_dimension_numbers<[1], [1], [0], [0], [0, 0, 1, 0], [], []>} : vector<8x128xbf16>, vector<128x128xbf16>, vector<8x128xf32> -> vector<8x128xf32>
      %34 = arith.index_cast %arg0 : i32 to index
      %35 = arith.index_cast %arg1 : i32 to index
      %36 = memref.load %arg3[%34, %35] : memref<2x16xi32, #tpu.memory_space<smem>>
      %37 = tpu.iota {dimensions = array<i32: 1>} : vector<8x16xi32>
      %38 = vector.broadcast %36 : i32 to vector<8x16xi32>
      %39 = arith.cmpi eq, %37, %38 : vector<8x16xi32>
      %c0_17 = arith.constant 0 : index
      %c0_18 = arith.constant 0 : index
      %40 = vector.load %arg9[%c0_17, %c0_18] : memref<8x16xf32, #tpu.memory_space<vmem>>, vector<8x16xf32>
      %cst_19 = arith.constant 0.000000e+00 : f32
      %41 = vector.broadcast %cst_19 : f32 to vector<8x16xf32>
      %42 = arith.select %39, %40, %41 : vector<8x16xi1>, vector<8x16xf32>
      %cst_20 = arith.constant dense<0.000000e+00> : vector<8xf32>
      %43 = vector.multi_reduction <add>, %42, %cst_20 [1] : vector<8x16xf32> to vector<8xf32>
      %44 = vector.shape_cast %43 : vector<8xf32> to vector<8x1xf32>
      %c0_21 = arith.constant 0 : index
      %c0_22 = arith.constant 0 : index
      %45 = vector.load %arg11[%c0_21, %c0_22] : memref<8x128xf32, #tpu.memory_space<vmem>>, vector<8x128xf32>
      %46 = vector.broadcast %44 : vector<8x1xf32> to vector<8x128xf32>
      %47 = arith.mulf %33, %46 : vector<8x128xf32>
      %48 = arith.addf %45, %47 : vector<8x128xf32>
      %c0_23 = arith.constant 0 : index
      %c0_24 = arith.constant 0 : index
      %49 = vector.load %arg11[%c0_23, %c0_24] : memref<8x128xf32, #tpu.memory_space<vmem>>, vector<8x128xf32>
      tpu.vector_store %arg11[%c0_23, %c0_24], %48 {strides = array<i32>} : memref<8x128xf32, #tpu.memory_space<vmem>>, vector<8x128xf32>,
    } else {
    }
    %c15_i32 = arith.constant 15 : i32
    %10 = arith.cmpi eq, %arg1, %c15_i32 : i32
    %c1_i32 = arith.constant 1 : i32
    %11 = arith.cmpi eq, %arg2, %c1_i32 : i32
    %12 = arith.andi %10, %11 : i1
    %13 = arith.extui %12 : i1 to i32
    %c0_i32_3 = arith.constant 0 : i32
    %14 = arith.cmpi ne, %13, %c0_i32_3 : i32
    scf.if %14 {
      %c0 = arith.constant 0 : index
      %c0_4 = arith.constant 0 : index
      %15 = vector.load %arg11[%c0, %c0_4] : memref<8x128xf32, #tpu.memory_space<vmem>>, vector<8x128xf32>
      %c0_5 = arith.constant 0 : index
      %c0_6 = arith.constant 0 : index
      %16 = vector.load %arg10[%c0_5, %c0_6] : memref<8x128xf32, #tpu.memory_space<vmem>>, vector<8x128xf32>
      tpu.vector_store %arg10[%c0_5, %c0_6], %15 {strides = array<i32>} : memref<8x128xf32, #tpu.memory_space<vmem>>, vector<8x128xf32>,
    } else {
    }
    return
  }
  func.func @transform_0(%arg0: i32, %arg1: i32, %arg2: i32, %arg3: memref<2x16xi32, #tpu.memory_space<smem>>, %arg4: memref<2xi32, #tpu.memory_space<smem>>) -> (i32, i32) {
    %c0_i32 = arith.constant 0 : i32
    %c0_i32_0 = arith.constant 0 : i32
    return %arg0, %c0_i32 : i32, i32
  }
  func.func @transform_1(%arg0: i32, %arg1: i32, %arg2: i32, %arg3: memref<2x16xi32, #tpu.memory_space<smem>>, %arg4: memref<2xi32, #tpu.memory_space<smem>>) -> (i32, i32, i32) {
    %0 = arith.index_cast %arg0 : i32 to index
    %1 = arith.index_cast %arg1 : i32 to index
    %2 = memref.load %arg3[%0, %1] : memref<2x16xi32, #tpu.memory_space<smem>>
    %3 = arith.index_cast %arg0 : i32 to index
    %4 = memref.load %arg4[%3] : memref<2xi32, #tpu.memory_space<smem>>
    %5 = arith.cmpi slt, %arg1, %4 : i32
    %c1_i32 = arith.constant 1 : i32
    %6 = arith.select %5, %arg2, %c1_i32 : i32
    %c0_i32 = arith.constant 0 : i32
    %c0_i32_0 = arith.constant 0 : i32
    return %2, %6, %c0_i32 : i32, i32, i32
  }
  func.func @transform_2(%arg0: i32, %arg1: i32, %arg2: i32, %arg3: memref<2x16xi32, #tpu.memory_space<smem>>, %arg4: memref<2xi32, #tpu.memory_space<smem>>) -> (i32, i32, i32) {
    %0 = arith.index_cast %arg0 : i32 to index
    %1 = arith.index_cast %arg1 : i32 to index
    %2 = memref.load %arg3[%0, %1] : memref<2x16xi32, #tpu.memory_space<smem>>
    %3 = arith.index_cast %arg0 : i32 to index
    %4 = memref.load %arg4[%3] : memref<2xi32, #tpu.memory_space<smem>>
    %5 = arith.cmpi slt, %arg1, %4 : i32
    %c1_i32 = arith.constant 1 : i32
    %6 = arith.select %5, %arg2, %c1_i32 : i32
    %c0_i32 = arith.constant 0 : i32
    %c0_i32_0 = arith.constant 0 : i32
    return %2, %6, %c0_i32 : i32, i32, i32
  }
  func.func @transform_3(%arg0: i32, %arg1: i32, %arg2: i32, %arg3: memref<2x16xi32, #tpu.memory_space<smem>>, %arg4: memref<2xi32, #tpu.memory_space<smem>>) -> (i32, i32, i32) {
    %0 = arith.index_cast %arg0 : i32 to index
    %1 = arith.index_cast %arg1 : i32 to index
    %2 = memref.load %arg3[%0, %1] : memref<2x16xi32, #tpu.memory_space<smem>>
    %3 = arith.index_cast %arg0 : i32 to index
    %4 = memref.load %arg4[%3] : memref<2xi32, #tpu.memory_space<smem>>
    %5 = arith.cmpi slt, %arg1, %4 : i32
    %c1_i32 = arith.constant 1 : i32
    %6 = arith.select %5, %arg2, %c1_i32 : i32
    %c0_i32 = arith.constant 0 : i32
    %c0_i32_0 = arith.constant 0 : i32
    return %2, %c0_i32, %6 : i32, i32, i32
  }
  func.func @transform_4(%arg0: i32, %arg1: i32, %arg2: i32, %arg3: memref<2x16xi32, #tpu.memory_space<smem>>, %arg4: memref<2xi32, #tpu.memory_space<smem>>) -> (i32, i32) {
    %c0_i32 = arith.constant 0 : i32
    %c0_i32_0 = arith.constant 0 : i32
    return %arg0, %c0_i32 : i32, i32
  }
  func.func @transform_5(%arg0: i32, %arg1: i32, %arg2: i32, %arg3: memref<2x16xi32, #tpu.memory_space<smem>>, %arg4: memref<2xi32, #tpu.memory_space<smem>>) -> (i32, i32) {
    %c0_i32 = arith.constant 0 : i32
    %c0_i32_0 = arith.constant 0 : i32
    return %arg0, %c0_i32 : i32, i32
  }
}

</mosaic_0001>

<bundles_post_ra>
// kernel: tpu_custom_call.1
= control target key start
LH: loop header
LB: loop body
LE: loop exit
PB: predicated region body
PF: predicated region fallthrough
CT: control target
= control target key end

     0   :  { %s2626_s0 = inlined_call_operand.hbm [shape: s32[2,16], index: 0, kind: input, shape index: {}]   ;;  %s2627_s2 = inlined_call_operand.hbm [shape: f32[16,128], index: 2, kind: input, shape index: {}]   ;;  %s2628_s3 = inlined_call_operand.hbm [shape: bf16[16,256,128], index: 3, kind: input, shape index: {}]   ;;  %s2629_s4 = inlined_call_operand.hbm [shape: bf16[16,256,128], index: 4, kind: input, shape index: {}]   ;;  %s2630_s5 = inlined_call_operand.hbm [shape: bf16[16,128,256], index: 5, kind: input, shape index: {}]   ;;  %s2631_s6 = inlined_call_operand.vmem [shape: f32[16,16], index: 6, kind: input, shape index: {}]   ;;  %s2632_s7 = inlined_call_operand.hbm [shape: f32[16,128], index: 7, kind: output, shape index: {}]   ;;  %s2633_s1 = inlined_call_operand.vmem [shape: s32[2], index: 1, kind: input, shape index: {}]  }
   0x1   :  { %2672 = sst [smem:[#allocation55_spill]] %s2627_s2  ;;  %s1493_s26 = scalar_lea.hbm %s2626_s0, 32 }
   0x2   :  { %2673 = sst [smem:[#allocation56_spill]] %s2628_s3  ;;  %p1494_p0 = scmp.ne.s32.totalorder %s2626_s0, %s1493_s26 }
   0x3   :  { %2674 = sst [smem:[#allocation57_spill]] %s2629_s4  ;;  %p1497_p1 = scmp.lt.u32.totalorder %s1493_s26, %s2626_s0 }
   0x4   :  { %2675 = sst [smem:[#allocation58_spill]] %s2630_s5 }
   0x5   :  { %2676 = sst [smem:[#allocation59_spill]] %s2631_s6  ;;  %p1499_p2 = pnand %p1497_p1, %p1494_p0 }
   0x6   :  { %2677 = sst [smem:[#allocation60_spill]] %s2632_s7 }
   0x7   :  { %1502 = shalt.err (!%p1499_p2)  }
   0x8   :  { %s1837_s8 = smov [#allocation4]   ;;  %s14_s13 = sshll.u32 %s2633_s1, 4  ;;  %s15_s13 = int_to_ptr.vmem [resolvable:$true] %s14_s13 }
   0x9   :  { %13 = dma.hbm_to_smem %s2626_s0, 32, %s1837_s8, [#allocation3] }
   0xa   :  { %s1503_s14 = scalar_lea.vmem %s15_s13, 16  ;;  %p1508_p4 = scmp.lt.s32.totalorder %s15_s13, %s15_s13 }
   0xb   :  { %p1504_p3 = scmp.ne.s32.totalorder %s15_s13, %s1503_s14  ;;  %p1509_p5 = scmp.lt.s32.totalorder %s1503_s14, %s1503_s14 }
   0xd   :  { %p1510_p6 = por %p1509_p5, %p1508_p4 }
   0xf   :  { %p1511_p7 = pnand %p1510_p6, %p1504_p3 }
  0x11   :  { %1514 = shalt.err (!%p1511_p7)  }
  0x12   :  { %s1838_s15 = smov [#allocation5]  }
  0x13   :  { %17 = dma.vmem_to_smem %s15_s13, 16, %s1838_s15, [#allocation3] }
  0x14   :  { %1739 = dma.done.wait [#allocation3], 48 }
  0x15   :  { %1740 = vsyncadd [#allocation3], 4294967248 }
  0x16   :  { %19 = sfence }
  0x17   :  { %20 = vsyncpa [#allocation7], 0 }
  0x18   :  { %22 = vsyncpa [#allocation7 + $0x1], 0 }
  0x19   :  { %23 = vsyncpa [#allocation10], 0 }
  0x1a   :  { %25 = vsyncpa [#allocation10 + $0x1], 0 }
  0x1b   :  { %26 = vsyncpa [#allocation13], 0 }
  0x1c   :  { %28 = vsyncpa [#allocation13 + $0x1], 0 }
  0x1d   :  { %29 = vsyncpa [#allocation8], 0 }
  0x1e   :  { %31 = vsyncpa [#allocation8 + $0x1], 0  ;;  %s1905_s0 = smov 0   ;;  %s1907_s1 = smov 0  }
  0x1f   :  { %s1909_s16 = smov 0   ;;  %s1911_s17 = smov 0  }
  0x20   :  { %s1913_s18 = smov 0   ;;  %s1915_s19 = smov 0  }
  0x21   :  { %s1917_s20 = smov 0   ;;  %s1919_s21 = smov 0  }
  0x22   :  { %s1921_s22 = smov 0   ;;  %s1923_s23 = smov 0  }
  0x23   :  { %s1925_s24 = smov 0   ;;  %s1927_s25 = smov 0  }
  0x24   :  { %s1929_s26 = smov 0   ;;  %s1931_s27 = smov 0  }
  0x25   :  { %s1933_s28 = smov 0   ;;  %s1935_s29 = smov 0  }
  0x26   :  { %s1937_s30 = smov 0   ;;  %s1939_s8 = smov 0  }
  0x27   :  { %s1941_s9 = smov 0  }
  0x28 LB: > { %2678 = sst [smem:[#allocation33_spill]] %s1763_s0  ;;  %s49_s10 = sadd.s32 1, %s1823_s29  ;;  %s1835_s9 = sphi %s1941_s9, %s37_s9   ;;  %s1831_s8 = sphi %s1939_s8, %s2801_s8   ;;  %s1827_s30 = sphi %s1937_s30, %s2800_s30   ;;  %s1823_s29 = sphi %s1935_s29, %s2799_s29   ;;  %s1819_s28 = sphi %s1933_s28, %s2798_s28   ;;  %s1815_s27 = sphi %s1931_s27, %s2797_s27   ;;  %s1811_s26 = sphi %s1929_s26, %s2796_s26   ;;  %s1807_s25 = sphi %s1927_s25, %s2787_s25   ;;  %s1803_s24 = sphi %s1925_s24, %s2795_s24   ;;  %s1799_s23 = sphi %s1923_s23, %s2794_s23   ;;  %s1795_s22 = sphi %s1921_s22, %s2785_s22   ;;  %s1791_s21 = sphi %s1919_s21, %s2784_s21   ;;  %s1787_s20 = sphi %s1917_s20, %s2793_s20   ;;  %s1783_s19 = sphi %s1915_s19, %s2782_s19   ;;  %s1779_s18 = sphi %s1913_s18, %s2781_s18   ;;  %s1775_s17 = sphi %s1911_s17, %s2780_s17   ;;  %s1771_s16 = sphi %s1909_s16, %s2791_s16   ;;  %s1767_s1 = sphi %s1907_s1, %s2779_s1   ;;  %s1763_s0 = sphi %s1905_s0, %s2778_s0  }
  0x29   : > { %2679 = sst [smem:[#allocation34_spill]] %s1767_s1  ;;  %s52_s11 = sadd.s32 1, %s1827_s30 }
  0x2a   : > { %2680 = sst [smem:[#allocation35_spill]] %s1771_s16  ;;  %p50_p8 = scmp.ge.s32.totalorder %s49_s10, 2 }
  0x2b   : > { %2681 = sst [smem:[#allocation36_spill]] %s1775_s17  ;;  %s56_s12 = sadd.s32 1, %s1831_s8 }
  0x2c   : > { %2682 = sst [smem:[#allocation37_spill]] %s1779_s18  ;;  %p2649_p9 = scmp.eq.s32.totalorder %s1835_s9, 0 }
  0x2d   : > { %2683 = sst [smem:[#allocation38_spill]] %s1783_s19  ;;  %s86_s13 = sshra.s32 %s1827_s30, 7 }
  0x2e   : > { %2684 = sst [smem:[#allocation39_spill]] %s1791_s21  ;;  %s2803_s10 = smov (%p50_p8, %s49_s10), 0 }
  0x2f   : > { %2685 = sst [smem:[#allocation40_spill]] %s1795_s22  ;;  %s2805_s11 = smov (!%p50_p8, %s52_s11), %s1827_s30 }
  0x30   : > { %2686 = sst [smem:[#allocation41_spill]] %s1799_s23  ;;  %s88_s14 = sadd.s32 %s1831_s8, %s86_s13 }
  0x31   : > { %2687 = sst [smem:[#allocation42_spill]] %s1807_s25  ;;  %s91_s15 = sand.u32 127, %s1827_s30 }
  0x32   : > { %2688 = sst [smem:[#allocation43_spill]] %s1811_s26  ;;  %p54_p10 = scmp.ge.s32.totalorder %s2805_s11, 16 }
  0x33   : > { %2689 = sst [smem:[#allocation44_spill]] %s1815_s27  ;;  %s1103_s7 = sshll.u32 %s88_s14, 7 }
  0x34   : > { %2690 = sst [smem:[#allocation45_spill]] %s1819_s28  ;;  %s2010_s6 = sadd.s32 %s1103_s7, %s91_s15 }
  0x35   : > { %2691 = sst [smem:[#allocation46_spill]] %s2803_s10  ;;  %s2807_s11 = smov (%p54_p10, %s2805_s11), 0 }
  0x36   : > { %s94_s26 = sld [smem:[#allocation5 + %s1831_s8]]  ;;  %s2809_s12 = smov (!%p54_p10, %s56_s12), %s1831_s8 }
  0x37   : > { %2692 = sst [smem:[#allocation47_spill]] %s2807_s11  ;;  %s97_s28 = sshra.s32 %s2807_s11, 7 }
  0x38   : > { %s93_s27 = sld [smem:[#allocation4 + %s2010_s6]]  ;;  %p58_p11 = scmp.ge.s32.totalorder %s2809_s12, 2 }
  0x39   : > { %s102_s13 = sand.u32 127, %s2807_s11  ;;  %s113_s14 = sadd.s32 1, %s1795_s22 }
  0x3a   : > { %p120_p12 = scmp.ne.s32.totalorder %s1795_s22, %s1791_s21  ;;  %s2811_s12 = smov (%p58_p11, %s2809_s12), 0 }
  0x3b   : > { %2693 = sst [smem:[#allocation48_spill]] %s2811_s12  ;;  %s99_s15 = sadd.s32 %s97_s28, %s2811_s12 }
  0x3c   : > { %p95_p13 = scmp.lt.s32.totalorder %s1827_s30, %s94_s26  ;;  %p2027_p0 = por %p120_p12, %p2649_p9 }
  0x3d   : > { %s105_s5 = sld [smem:[#allocation5 + %s2811_s12]]  ;;  %s1104_s16 = sshll.u32 %s99_s15, 7 }
  0x3e   : > { %s96_s4 = scalar_select %p95_p13, %s1823_s29, 1 }
  0x3f   : > { %s2036_s1 = sadd.s32 %s1104_s16, %s102_s13  ;;  %p2648_p2 = scmp.lt.s32.totalorder %s1835_s9, 64 }
  0x40   : > { %s104_s0 = sld [smem:[#allocation4 + %s2036_s1]]  ;;  %s322_s17 = sand.u32 1, %s1795_s22  }
  0x41   : > { %s1113_s28 = sshll.u32 %s322_s17, 6  ;;  %p2047_p4 = pnand %p2648_p2, %p2027_p0 }
  0x42   : > { %s324_s18 = scalar_lea.vmem [#allocation9], %s1113_s28  ;;  %p1127_p6 = scmp.ge.s32.totalorder %s1835_s9, 1 }
  0x43   : > { %p106_p3 = scmp.lt.s32.totalorder %s2807_s11, %s105_s5  ;;  %s344_s5 = sshll.u32 %s324_s18, 4  ;;  %s2052_s5 = int_to_ptr.vmem [resolvable:$true] %s344_s5 }
  0x44   : > { %s1253_s17 = scalar_select %p2027_p0, [#allocation4], [#allocation15] }
  0x45   : > { %s107_s16 = scalar_select %p106_p3, %s2803_s10, 1 }
  0x46   : > { %s108_s13 = ssub.s32 %s93_s27, %s104_s0  ;;  %s2813_s17 = smov (!%p2648_p2, %s1253_s17), [#allocation21] }
  0x47   : > { %s109_s19 = ssub.s32 %s96_s4, %s107_s16  ;;  %p426_p7 = scmp.lt.s32.totalorder %s1835_s9, 65 }
  0x48   : > { %s110_s26 = sor.u32 %s109_s19, %s108_s13  ;;  %s2084_s7 = sadd.s32 4294967295, %s1835_s9  }
  0x49   : > { %p111_p5 = scmp.eq.s32.totalorder %s110_s26, 0  ;;  %p2077_p8 = pnand %p1127_p6, %p426_p7 }
  0x4a   : > { %s1254_s10 = scalar_select %p2027_p0, %s2010_s6, 0 }
  0x4b   : > { %s2057_s11 = scalar_select %p111_p5, %s1795_s22, %s113_s14  }
  0x4c   : > { %s2815_s10 = smov (!%p2648_p2, %s1254_s10), 0  ;;  %s1102_s28 = sadd.s32 4294967294, %s1835_s9  }
  0x4d   : > { %2696 = sst [smem:[#allocation49_spill]] %s2057_s11  ;;  %s60_s13 = ssub.s32 %s1831_s8, %s2811_s12 }
  0x4e   : > { %s1255_s4 = scalar_select %p2027_p0, [#allocation5], [#allocation16] }
  0x4f   : > { %s332_s0 = sld [smem:[%s2813_s17 + %s2815_s10]]  ;;  %p2089_p11 = scmp.eq.s32.totalorder %s60_s13, 0 }
  0x50   : > { %s1256_s18 = scalar_select %p2027_p0, %s1831_s8, 0 }
  0x51   : > { %s2817_s4 = smov (!%p2648_p2, %s1255_s4), [#allocation22]  ;;  %s2699_s3 = sld [smem:[#allocation56_spill]] }
  0x52   : > { %s2819_s18 = smov (!%p2648_p2, %s1256_s18), 0  ;;  %s2700_s22 = sand.u32 1, %s1835_s9  }
  0x53   : > { %s333_s19 = sld [smem:[%s2817_s4 + %s2819_s18]]  ;;  %p1517_p13 = pneg %p2047_p4 }
  0x54   : > { %s2697_s14 = scalar_select %p2077_p8, 1, 0 }
  0x55   : > { %s1116_s27 = sshll.u32 %s332_s0, 5 }
  0x57   : > { %s1520_s13 = scalar_lea.hbm %s2699_s3, 32768 }
  0x59   : > { %p334_p10 = scmp.lt.s32.totalorder %s1827_s30, %s333_s19  ;;  %s63_s19 = sadd.s32 1, %s1807_s25 }
  0x5b   : > { %s335_s10 = scalar_select %p334_p10, %s1823_s29, 1 }
  0x5d   : > { %s1115_s26 = sshll.u32 %s335_s10, 4  ;;  %s2101_s10 = scalar_lea.sflag [#allocation10], %s2700_s22 }
  0x5e   : > { %s341_s16 = sadd.s32 %s1116_s27, %s1115_s26 }
  0x5f   : > { %s1117_s17 = sshll.u32 %s341_s16, 6 }
  0x60   : > { %s2096_s18 = scalar_lea.hbm %s2699_s3, %s1117_s17 }
  0x61   : > { %s1515_s27 = scalar_lea.hbm %s2096_s18, 1024  ;;  %p1521_p5 = scmp.lt.u32.totalorder %s2096_s18, %s2699_s3 }
  0x62   : > { %p1516_p12 = scmp.ne.s32.totalorder %s2096_s18, %s1515_s27  ;;  %p1522_p6 = scmp.lt.u32.totalorder %s1520_s13, %s1515_s27 }
  0x63   : > { %p1524_p10 = scmp.lt.u32.totalorder %s1515_s27, %s2096_s18 }
  0x64   : > { %p1518_p0 = pnand %p1517_p13, %p1516_p12  ;;  %p1523_p7 = por %p1522_p6, %p1521_p5 }
  0x66   : > { %p1519_p3 = pneg %p1518_p0  ;;  %p1525_p2 = por %p1524_p10, %p1523_p7 }
  0x68   : > { %p1526_p1 = pnand %p1525_p2, %p1519_p3 }
  0x6a   : > { %1529 = shalt.err (!%p1526_p1)
}
  0x6b   : > { %s1530_s22 = scalar_lea.vmem %s2052_s5, 1024  ;;  %s1839_s0 = smov [#allocation9]  }
  0x6c   : > { %p1531_p12 = scmp.ne.s32.totalorder %s2052_s5, %s1530_s22  ;;  %s1535_s26 = sshll.u32 %s1839_s0, 4  ;;  %s1536_s26 = int_to_ptr.vmem [resolvable:$false] %s1535_s26 }
  0x6d   : > { %s1537_s16 = scalar_lea.vmem %s1536_s26, 2048  ;;  %p1538_p8 = scmp.lt.s32.totalorder %s2052_s5, %s1536_s26 }
  0x6e   : > { %p1533_p0 = pnand %p1531_p12, %p1517_p13  ;;  %p1539_p5 = scmp.lt.s32.totalorder %s1537_s16, %s1530_s22 }
  0x70   : > { %p1534_p9 = pneg %p1533_p0  ;;  %p1540_p6 = por %p1539_p5, %p1538_p8 }
  0x72   : > { %p1541_p7 = pnand %p1540_p6, %p1534_p9 }
  0x74   : > { %1544 = shalt.err (!%p1541_p7)
}
  0x75   : > { %s2650_s27 = smov 64   ;;  %s2652_s13 = smov 4  }
  0x76   : > { %1284 = dma.hbm_to_vmem [thread:$0]  (!%p2047_p4), %s2096_s18, 1024, %s2052_s5, %s2101_s10, %s2650_s27, %s2650_s27, %s2652_s13  }
  0x77   : > { %s2137_s17 = scalar_select %p2089_p11, %s1807_s25, %s63_s19  }
  0x78   : > { %p70_p9 = scmp.ne.s32.totalorder %s1807_s25, %s1803_s24  ;;  %p76_p1 = scmp.ne.s32.totalorder %s1803_s24, %s1799_s23 }
  0x79   : > { %2701 = sst [smem:[#allocation50_spill]] %s2137_s17  ;;  %p2654_p2 = scmp.eq.s32.totalorder %s2084_s7, 0 }
  0x7a   : > { %p276_p8 = scmp.eq.s32.totalorder %s2084_s7, 63  ;;  %p2702_p13 = scmp.eq.s32.totalorder %s1835_s9, 0 }
  0x7b   : > { %p282_p10 = scmp.eq.s32.totalorder %s1102_s28, 63  ;;  %p2151_p12 = por %p2654_p2, %p76_p1 }
  0x7c   : > { %p72_p3 = por %p2702_p13, %p70_p9  ;;  %p2704_p4 = scmp.ne.s32.totalorder %s1791_s21, %s1787_s20 }
  0x7d   : > { %s2703_s15 = scalar_select %p2151_p12, 1, 0 }
  0x7e   : > { %p2160_p0 = por %p2704_p4, %p2654_p2  ;;  %p2164_p11 = por %p276_p8, %p70_p9 }
  0x7f   : > { %p2168_p5 = por %p282_p10, %p76_p1  ;;  %s302_s28 = sand.u32 1, %s1807_s25  }
  0x80   : > { %s2705_s11 = scalar_select %p2160_p0, 1, 0 }
  0x81   : > { %s2707_s5 = scalar_select %p2164_p11, 1, 0 }
  0x82   : > { %2706 = sst [smem:[#allocation51_spill]] %s2705_s11  ;;  %s1112_s19 = sshll.u32 %s1831_s8, 7 }
  0x83   : > { %2708 = sst [smem:[#allocation52_spill]] %s2707_s5  ;;  %s1111_s4 = sshll.u32 %s302_s28, 3 }
  0x84   : > { %s2709_s18 = scalar_select %p2168_p5, 1, 0 }
  0x85   : > { %s2711_s2 = sld [smem:[#allocation55_spill]]  ;;  %s306_s20 = scalar_lea.vmem [#allocation6], %s1111_s4 }
  0x86   : > { %2710 = sst [smem:[#allocation53_spill]] %s2709_s18  ;;  %s313_s16 = sshll.u32 %s306_s20, 4  ;;  %s2185_s16 = int_to_ptr.vmem [resolvable:$true] %s313_s16 }
  0x87   : > { %p2712_p6 = scmp.lt.s32.totalorder %s1835_s9, 64  ;;  %s303_s13 = scalar_lea.sflag [#allocation7], %s302_s28 }
  0x89   : > { %p2181_p7 = pnand %p2712_p6, %p72_p3 }
  0x8b   : > { %s2177_s26 = scalar_lea.hbm %s2711_s2, %s1112_s19  ;;  %p1547_p1 = pneg %p2181_p7 }
  0x8c   : > { %s1545_s3 = scalar_lea.hbm %s2177_s26, 128  ;;  %s1550_s22 = scalar_lea.hbm %s2711_s2, 256 }
  0x8d   : > { %p1546_p9 = scmp.ne.s32.totalorder %s2177_s26, %s1545_s3  ;;  %p1551_p3 = scmp.lt.u32.totalorder %s2177_s26, %s2711_s2 }
  0x8e   : > { %p1552_p10 = scmp.lt.u32.totalorder %s1550_s22, %s1545_s3  ;;  %p1554_p6 = scmp.lt.u32.totalorder %s1545_s3, %s2177_s26 }
  0x8f   : > { %p1548_p8 = pnand %p1547_p1, %p1546_p9 }
  0x90   : > { %p1553_p4 = por %p1552_p10, %p1551_p3 }
  0x91   : > { %p1549_p13 = pneg %p1548_p8 }
  0x92   : > { %p1555_p2 = por %p1554_p6, %p1553_p4 }
  0x94   : > { %p1556_p5 = pnand %p1555_p2, %p1549_p13 }
  0x96   : > { %1559 = shalt.err (!%p1556_p5)
}
  0x97   : > { %s1560_s28 = scalar_lea.vmem %s2185_s16, 128  ;;  %s1842_s19 = smov [#allocation6]  }
  0x98   : > { %p1561_p9 = scmp.ne.s32.totalorder %s2185_s16, %s1560_s28  ;;  %s1565_s4 = sshll.u32 %s1842_s19, 4  ;;  %s1566_s4 = int_to_ptr.vmem [resolvable:$false] %s1565_s4 }
  0x99   : > { %s1567_s0 = scalar_lea.vmem %s1566_s4, 256  ;;  %p1568_p0 = scmp.lt.s32.totalorder %s2185_s16, %s1566_s4 }
  0x9a   : > { %p1563_p8 = pnand %p1561_p9, %p1547_p1  ;;  %p1569_p3 = scmp.lt.s32.totalorder %s1567_s0, %s1560_s28 }
  0x9c   : > { %p1564_p11 = pneg %p1563_p8  ;;  %p1570_p10 = por %p1569_p3, %p1568_p0 }
  0x9e   : > { %p1571_p4 = pnand %p1570_p10, %p1564_p11 }
  0xa0   : > { %1574 = shalt.err (!%p1571_p4)
}
  0xa1   : > { %s2714_s3 = sld [smem:[#allocation37_spill]]  ;;  %s2715_s22 = sld [smem:[#allocation38_spill]] }
  0xa2   : > { %s2716_s20 = sld [smem:[#allocation36_spill]]  ;;  %s2717_s28 = sld [smem:[#allocation47_spill]] }
  0xa3   : > { %s2718_s19 = sld [smem:[#allocation46_spill]]  ;;  %p2719_p11 = scmp.eq.s32.totalorder %s1835_s9, 0 }
  0xa4   : > { %1277 = dma.hbm_to_vmem [thread:$0]  (!%p2181_p7), %s2177_s26, 128, %s2185_s16, %s303_s13  }
  0xa5   : > { %s143_s4 = sld [smem:[#allocation4 + %s2010_s6]]  ;;  %p2721_p1 = scmp.eq.s32.totalorder %s2084_s7, 0 }
  0xa6   : > { %s144_s27 = sld [smem:[#allocation5 + %s1831_s8]]  ;;  %p2724_p8 = scmp.lt.s32.totalorder %s1835_s9, 64 }
  0xa7   : > { %s154_s0 = sld [smem:[#allocation4 + %s2036_s1]]  ;;  %p170_p2 = scmp.ne.s32.totalorder %s2715_s22, %s2714_s3 }
  0xa8   : > { %s155_s2 = sld [smem:[#allocation5 + %s2811_s12]]  ;;  %p176_p0 = scmp.ne.s32.totalorder %s2714_s3, %s2716_s20 }
  0xa9   : > { %s356_s17 = sand.u32 1, %s2715_s22   ;;  %p2223_p5 = por %p170_p2, %p2719_p11 }
  0xaa   : > { %p2229_p7 = por %p176_p0, %p2721_p1  ;;  %s1118_s26 = sshll.u32 %s356_s17, 6 }
  0xab   : > { %s1258_s18 = scalar_select %p2223_p5, [#allocation4], [#allocation17] }
  0xac   : > { %s2722_s13 = scalar_select %p2229_p7, 1, 0 }
  0xad   : > { %p145_p13 = scmp.lt.s32.totalorder %s1827_s30, %s144_s27  ;;  %s158_s16 = ssub.s32 %s143_s4, %s154_s0 }
  0xae   : > { %2723 = sst [smem:[#allocation36_spill]] %s2722_s13  ;;  %p156_p6 = scmp.lt.s32.totalorder %s2717_s28, %s155_s2 }
  0xaf   : > { %s146_s3 = scalar_select %p145_p13, %s1823_s29, 1 }
  0xb0   : > { %s157_s20 = scalar_select %p156_p6, %s2718_s19, 1 }
  0xb1   : > { %s163_s5 = sadd.s32 1, %s2715_s22  ;;  %p2244_p3 = pnand %p2724_p8, %p2223_p5 }
  0xb2   : > { %s159_s23 = ssub.s32 %s146_s3, %s157_s20  ;;  %s2726_s4 = sld [smem:[#allocation33_spill]] }
  0xb3   : > { %s160_s11 = sor.u32 %s159_s23, %s158_s16  ;;  %s2727_s27 = sld [smem:[#allocation34_spill]] }
  0xb4   : > { %p161_p9 = scmp.eq.s32.totalorder %s160_s11, 0  ;;  %p2729_p10 = pmov %p2724_p8 }
  0xb5   : > { %s1259_s2 = scalar_select %p2223_p5, %s2010_s6, 0 }
  0xb6   : > { %s2821_s22 = smov (!%p161_p9, %s2715_s22), %s163_s5  ;;  %s2823_s18 = smov (!%p2729_p10, %s1258_s18), [#allocation23] }
  0xb7   : > { %2728 = sst [smem:[#allocation54_spill]] %s2821_s22  ;;  %p2730_p4 = pmov %p2724_p8 }
  0xb8   : > { %s2731_s23 = sld [smem:[#allocation35_spill]]  ;;  %s358_s3 = scalar_lea.vmem [#allocation11], %s1118_s26 }
  0xb9   : > { %s2825_s2 = smov (!%p2730_p4, %s1259_s2), 0  ;;  %p2732_p2 = pmov %p2730_p4 }
  0xba   : > { %s1260_s11 = scalar_select %p2223_p5, [#allocation5], [#allocation18] }
  0xbb   : > { %s1261_s0 = scalar_select %p2223_p5, %s1831_s8, 0 }
  0xbc   : > { %s2827_s11 = smov (!%p2732_p2, %s1260_s11), [#allocation24]  ;;  %p2733_p0 = pmov %p2732_p2 }
  0xbd   : > { %s366_s16 = sld [smem:[%s2823_s18 + %s2825_s2]]  ;;  %s378_s20 = sshll.u32 %s358_s3, 4  ;;  %s2291_s20 = int_to_ptr.vmem [resolvable:$true] %s378_s20 }
  0xbe   : > { %s2829_s0 = smov (!%p2733_p0, %s1261_s0), 0  ;;  %s2268_s22 = sld [smem:[#allocation5 + %s1831_s8]] }
  0xbf   : > { %s367_s5 = sld [smem:[%s2827_s11 + %s2829_s0]]  ;;  %p226_p11 = scmp.ne.s32.totalorder %s2727_s27, %s2726_s4 }
  0xc0   : > { %s2271_s13 = sld [smem:[#allocation4 + %s2010_s6]]  ;;  %p220_p1 = scmp.ne.s32.totalorder %s2731_s23, %s2727_s27 }
  0xc1   : > { %s2274_s25 = sld [smem:[#allocation5 + %s2811_s12]]  ;;  %p2734_p13 = scmp.eq.s32.totalorder %s2084_s7, 0 }
  0xc2   : > { %s2277_s21 = sld [smem:[#allocation4 + %s2036_s1]]  ;;  %p2736_p9 = scmp.eq.s32.totalorder %s1835_s9, 0 }
  0xc3   : > { %s1121_s18 = sshll.u32 %s366_s16, 5  ;;  %p2286_p6 = por %p226_p11, %p2734_p13 }
  0xc4   : > { %p2295_p8 = por %p220_p1, %p2736_p9  ;;  %p1577_p0 = pneg %p2244_p3 }
  0xc5   : > { %p368_p5 = scmp.lt.s32.totalorder %s1827_s30, %s367_s5  ;;  %s2738_s5 = sld [smem:[#allocation57_spill]] }
  0xc6   : > { %s2735_s26 = scalar_select %p2286_p6, 1, 0 }
  0xc7   : > { %s369_s2 = scalar_select %p368_p5, %s1823_s29, 1 }
  0xc8   : > { %s208_s12 = ssub.s32 %s2271_s13, %s2277_s21 }
  0xc9   : > { %s1120_s11 = sshll.u32 %s369_s2, 4 }
  0xca   : > { %s375_s4 = sadd.s32 %s1121_s18, %s1120_s11 }
  0xcb   : > { %s1122_s0 = sshll.u32 %s375_s4, 6  ;;  %s1580_s4 = scalar_lea.hbm %s2738_s5, 32768 }
  0xcc   : > { %s2306_s3 = scalar_lea.hbm %s2738_s5, %s1122_s0 }
  0xcd   : > { %s1575_s2 = scalar_lea.hbm %s2306_s3, 1024  ;;  %p1581_p1 = scmp.lt.u32.totalorder %s2306_s3, %s2738_s5 }
  0xce   : > { %p1576_p2 = scmp.ne.s32.totalorder %s2306_s3, %s1575_s2  ;;  %p1582_p13 = scmp.lt.u32.totalorder %s1580_s4, %s1575_s2 }
  0xcf   : > { %p1584_p4 = scmp.lt.u32.totalorder %s1575_s2, %s2306_s3 }
  0xd0   : > { %p1578_p11 = pnand %p1577_p0, %p1576_p2  ;;  %p1583_p9 = por %p1582_p13, %p1581_p1 }
  0xd2   : > { %p1579_p5 = pneg %p1578_p11  ;;  %p1585_p10 = por %p1584_p4, %p1583_p9 }
  0xd4   : > { %p1586_p6 = pnand %p1585_p10, %p1579_p5 }
  0xd6   : > { %1589 = shalt.err (!%p1586_p6)
}
  0xd7   : > { %s1590_s16 = scalar_lea.vmem %s2291_s20, 1024  ;;  %s1843_s18 = smov [#allocation11]  }
  0xd8   : > { %p1591_p2 = scmp.ne.s32.totalorder %s2291_s20, %s1590_s16  ;;  %s1595_s11 = sshll.u32 %s1843_s18, 4  ;;  %s1596_s11 = int_to_ptr.vmem [resolvable:$false] %s1595_s11 }
  0xd9   : > { %s1597_s27 = scalar_lea.vmem %s1596_s11, 2048  ;;  %p1598_p12 = scmp.lt.s32.totalorder %s2291_s20, %s1596_s11 }
  0xda   : > { %p1593_p11 = pnand %p1591_p2, %p1577_p0  ;;  %p1599_p1 = scmp.lt.s32.totalorder %s1597_s27, %s1590_s16 }
  0xdc   : > { %p1594_p7 = pneg %p1593_p11  ;;  %p1600_p13 = por %p1599_p1, %p1598_p12 }
  0xde   : > { %p1601_p4 = pnand %p1600_p13, %p1594_p7 }
  0xe0   : > { %1604 = shalt.err (!%p1601_p4)
}
  0xe1   : > { %s2739_s2 = smov 4   ;;  %s2740_s4 = smov 64  }
  0xe2   : > { %1291 = dma.hbm_to_vmem [thread:$0]  (!%p2244_p3), %s2306_s3, 1024, %s2291_s20, %s2101_s10, %s2740_s4, %s2740_s4, %s2739_s2  }
  0xe3   : > { %p2741_p12 = scmp.lt.s32.totalorder %s1827_s30, %s2268_s22  ;;  %p2742_p7 = scmp.lt.s32.totalorder %s2717_s28, %s2274_s25 }
  0xe4   : > { %s1263_s0 = scalar_select %p2295_p8, [#allocation4], [#allocation19] }
  0xe5   : > { %s196_s17 = scalar_select %p2741_p12, %s1823_s29, 1 }
  0xe6   : > { %s2831_s19 = smov (!%p2742_p7, %s2718_s19), 1  ;;  %s213_s11 = sadd.s32 1, %s2731_s23 }
  0xe7   : > { %s209_s16 = ssub.s32 %s196_s17, %s2831_s19  ;;  %p2743_p10 = scmp.lt.s32.totalorder %s1835_s9, 64 }
  0xe8   : > { %s210_s18 = sor.u32 %s209_s16, %s208_s12  ;;  %s2833_s6 = smov (!%p2295_p8, %s2010_s6), 0 }
  0xe9   : > { %p211_p6 = scmp.eq.s32.totalorder %s210_s18, 0  ;;  %p2357_p0 = pnand %p2743_p10, %p2295_p8 }
  0xea   : > { %p2745_p3 = pmov %p2743_p10  ;;  %s388_s12 = sand.u32 1, %s2731_s23  }
  0xeb   : > { %s2365_s10 = scalar_select %p211_p6, %s2731_s23, %s213_s11  }
  0xec   : > { %s2835_s0 = smov (!%p2745_p3, %s1263_s0), [#allocation25]  ;;  %p2746_p5 = pmov %p2745_p3 }
  0xed   : > { %s1265_s21 = scalar_select %p2295_p8, [#allocation5], [#allocation20] }
  0xee   : > { %s2837_s6 = smov (!%p2746_p5, %s2833_s6), 0  ;;  %p2747_p9 = pmov %p2745_p3 }
  0xef   : > { %s1266_s22 = scalar_select %p2295_p8, %s1831_s8, 0 }
  0xf0   : > { %s2839_s21 = smov (!%p2747_p9, %s1265_s21), [#allocation26]  ;;  %p2748_p2 = pmov %p2745_p3 }
  0xf1   : > { %s400_s28 = sld [smem:[%s2835_s0 + %s2837_s6]]  ;;  %s1123_s19 = sshll.u32 %s388_s12, 6 }
  0xf2   : > { %s2841_s22 = smov (!%p2748_p2, %s1266_s22), 0  ;;  %s392_s20 = scalar_lea.vmem [#allocation12], %s1123_s19 }
  0xf3   : > { %s401_s13 = sld [smem:[%s2839_s21 + %s2841_s22]]  ;;  %s411_s25 = sshll.u32 %s392_s20, 4  ;;  %s2383_s25 = int_to_ptr.vmem [resolvable:$true] %s411_s25 }
  0xf4   : > { %s2749_s11 = sld [smem:[#allocation58_spill]]  ;;  %s2390_s6 = scalar_lea.sflag [#allocation13], %s388_s12 }
  0xf5   : > { %p1607_p1 = pneg %p2357_p0 }
  0xf7   : > { %s1125_s3 = sshll.u32 %s400_s28, 5 }
  0xf9   : > { %p402_p11 = scmp.lt.s32.totalorder %s1827_s30, %s401_s13 }
  0xfa   : > { %s1610_s28 = scalar_lea.hbm %s2749_s11, 32768 }
  0xfb   : > { %s403_s17 = scalar_select %p402_p11, %s1823_s29, 1 }
  0xfd   : > { %s408_s16 = sadd.s32 %s1125_s3, %s403_s17 }
  0xfe   : > { %s1126_s23 = sshll.u32 %s408_s16, 6 }
  0xff   : > { %s2388_s5 = scalar_lea.hbm %s2749_s11, %s1126_s23 }
 0x100   : > { %s1605_s0 = scalar_lea.hbm %s2388_s5, 1024  ;;  %p1611_p12 = scmp.lt.u32.totalorder %s2388_s5, %s2749_s11 }
 0x101   : > { %p1606_p8 = scmp.ne.s32.totalorder %s2388_s5, %s1605_s0  ;;  %p1612_p7 = scmp.lt.u32.totalorder %s1610_s28, %s1605_s0 }
 0x102   : > { %p1614_p10 = scmp.lt.u32.totalorder %s1605_s0, %s2388_s5 }
 0x103   : > { %p1608_p13 = pnand %p1607_p1, %p1606_p8  ;;  %p1613_p6 = por %p1612_p7, %p1611_p12 }
 0x105   : > { %p1609_p4 = pneg %p1608_p13  ;;  %p1615_p3 = por %p1614_p10, %p1613_p6 }
 0x107   : > { %p1616_p5 = pnand %p1615_p3, %p1609_p4 }
 0x109   : > { %1619 = shalt.err (!%p1616_p5)
}
 0x10a   : > { %s1620_s12 = scalar_lea.vmem %s2383_s25, 1024  ;;  %s1844_s20 = smov [#allocation12]  }
 0x10b   : > { %p1621_p9 = scmp.ne.s32.totalorder %s2383_s25, %s1620_s12  ;;  %s1625_s3 = sshll.u32 %s1844_s20, 4  ;;  %s1626_s3 = int_to_ptr.vmem [resolvable:$false] %s1625_s3 }
 0x10c   : > { %s1627_s17 = scalar_lea.vmem %s1626_s3, 2048  ;;  %p1628_p8 = scmp.lt.s32.totalorder %s2383_s25, %s1626_s3 }
 0x10d   : > { %p1623_p2 = pnand %p1621_p9, %p1607_p1  ;;  %p1629_p13 = scmp.lt.s32.totalorder %s1627_s17, %s1620_s12 }
 0x10f   : > { %p1624_p11 = pneg %p1623_p2  ;;  %p1630_p12 = por %p1629_p13, %p1628_p8 }
 0x111   : > { %p1631_p7 = pnand %p1630_p12, %p1624_p11 }
 0x113   : > { %1634 = shalt.err (!%p1631_p7)
}
 0x114   : > { %s1845_s16 = smov 128   ;;  %p2750_p1 = scmp.ne.s32.totalorder %s2697_s14, 0 }
 0x115   : > { %1298 = dma.hbm_to_vmem [thread:$0]  (!%p2357_p0), %s2388_s5, 1024, %s2383_s25, %s2390_s6, %s1845_s16, %s2740_s4, %s2739_s2  }
 0x116   : > { %430 = sbr.rel (%p2750_p1) target bundleno = 917 (0x395), region = 40  ;;  %s2423_s23 = sand.u32 (!%p2750_p1), 1, %s1803_s24  }
 0x117   : > { %s1128_s1 = sshll.u32 (!%p2750_p1), %s2423_s23, 3  ;;  %s433_s18 = scalar_lea.sflag (!%p2750_p1), [#allocation7], %s2423_s23 }
 0x118   : > { %s2429_s27 = scalar_lea.vmem (!%p2750_p1), [#allocation6], %s1128_s1  ;;  %p2751_p4 = scmp.ne.s32.totalorder (!%p2750_p1), %s2703_s15, 0 }
 0x11d   : > { %1742 = dma.done.wait (%p2751_p4), %s433_s18, 128  }
 0x11e   : > { %1744 = vsyncadd (%p2751_p4), %s433_s18, 4294967168  ;;  %s2752_s14 = sld [smem:[#allocation39_spill]]  ;;  %s2753_s5 = sld [smem:[#allocation51_spill]] }
 0x11f   : > { %s441_s2 = sand.u32 1, %s2084_s7  }
 0x120   : > { %s442_s6 = scalar_lea.sflag [#allocation10], %s441_s2 }
 0x124   : > { %s443_s4 = sand.u32 1, %s2752_s14   ;;  %p2754_p0 = scmp.ne.s32.totalorder %s2753_s5, 0 }
 0x125   : > { %s1129_s25 = sshll.u32 %s443_s4, 6 }
 0x126   : > { %s2437_s0 = scalar_lea.vmem [#allocation9], %s1129_s25 }
 0x127   : > { %1746 = dma.done.wait (%p2754_p0), %s442_s6, 1024  }
 0x128   : > { %1748 = vsyncadd (%p2754_p0), %s442_s6, 4294966272  ;;  %s2755_s21 = sld [smem:[#allocation37_spill]]  ;;  %s2756_s22 = sld [smem:[#allocation36_spill]] }
 0x12e   : > { %s452_s28 = sand.u32 1, %s2755_s21   ;;  %p2757_p6 = scmp.ne.s32.totalorder %s2756_s22, 0 }
 0x12f   : > { %s1130_s19 = sshll.u32 %s452_s28, 6 }
 0x130   : > { %s2444_s15 = scalar_lea.vmem [#allocation11], %s1130_s19 }
 0x131   : > { %1750 = dma.done.wait (%p2757_p6), %s442_s6, 1024  }
 0x132   : > { %1752 = vsyncadd (%p2757_p6), %s442_s6, 4294966272  ;;  %s2758_s7 = sld [smem:[#allocation34_spill]]  ;;  %p2759_p10 = scmp.ne.s32.totalorder %s2735_s26, 0 }
 0x138   : > { %s459_s13 = sand.u32 1, %s2758_s7  }
 0x139   : > { %s1131_s12 = sshll.u32 %s459_s13, 6  ;;  %s460_s20 = scalar_lea.sflag [#allocation13], %s459_s13 }
 0x13a   : > { %s2451_s3 = scalar_lea.vmem [#allocation12], %s1131_s12 }
 0x13b   : > { %1754 = dma.done.wait (%p2759_p10), %s460_s20, 1024  }
 0x13c   : > { %1756 = vsyncadd (%p2759_p10), %s460_s20, 4294966272  ;;  %s2760_s17 = sld [smem:[#allocation45_spill]]  ;;  %s2761_s16 = sld [smem:[#allocation44_spill]] }
 0x13d   : > { %s2762_s18 = sld [smem:[#allocation43_spill]]  ;;  %s2763_s4 = sld [smem:[#allocation59_spill]] }
 0x13e   : > { %s2468_s6 = scalar_lea.vmem [#allocation14], %s1128_s1 }
 0x142   : > { %p544_p3 = scmp.lt.s32.totalorder %s2760_s17, 1  ;;  %p549_p5 = scmp.eq.s32.totalorder %s2761_s16, 0 }
 0x143   : > { %p550_p9 = scmp.eq.s32.totalorder %s2762_s18, 0 }
 0x144   : > { %s2843_s17 = smov (!%p544_p3, %s2760_s17), 1 }
 0x145   : > { %p551_p2 = pnand %p550_p9, %p549_p5  ;;  %s1133_s14 = sshll.u32 %s2843_s17, 3 }
 0x146   : > { %s2464_s25 = scalar_lea.vmem %s2763_s4, %s1133_s14  ;;  %v1846_v0 = vmov (!%p551_p2), 0.0  }
 0x147   : > { %554 = sbr.rel (%p551_p2) target bundleno = 334 (0x14e), region = 60  ;;  %555 = vst [vmem:[#allocation2] sm:$0xff] (!%p551_p2), %v1846_v0 }
 0x14e PF: > { %s2764_s26 = sld [smem:[#allocation45_spill]]  ;;  %s2765_s22 = sld [smem:[#allocation44_spill]] }
 0x154   : > { %s556_s21 = sld [smem:[#allocation5 + %s2764_s26]] }
 0x15a   : > { %p1134_p11 = scmp.ge.s32.totalorder %s2765_s22, %s556_s21 }
 0x15b   : > { %v1465_v1 = vld [vmem:[%s2437_s0] sm:$0xff] (!%p1134_p11)   ;;  %v1847_v2 = vmov (!%p1134_p11), 0.0   ;;  %vm1848_vm0 = vmmov (!%p1134_p11), 0   ;;  %v1466_v4 = vld [vmem:[%s2437_s0 + $0x8] sm:$0xff] (!%p1134_p11)   ;;  %v1467_v6 = vld [vmem:[%s2437_s0 + $0x10] sm:$0xff] (!%p1134_p11)   ;;  %s2766_s1 = sld [smem:[#allocation44_spill]] (!%p1134_p11)  ;;  %v892_v28 = vlaneseq (!%p1134_p11) }
 0x15c   : > { %560 = sbr.rel (%p1134_p11) target bundleno = 873 (0x369), region = 64  ;;  %1192 = vmatprep.subr.bf16.mxu0 (!%p1134_p11), %v1847_v2  ;;  %1212 = vmatprep.subr.bf16.mxu1 (!%p1134_p11), %v1847_v2  ;;  %v1469_v3 = vld [vmem:[%s2444_s15] sm:$0xff] (!%p1134_p11)   ;;  %v1471_v5 = vld [vmem:[%s2444_s15 + $0x8] sm:$0xff] (!%p1134_p11)   ;;  %v1473_v7 = vld [vmem:[%s2444_s15 + $0x10] sm:$0xff] (!%p1134_p11)   ;;  %vm898_vm1 = vcmask (!%p1134_p11), 130048  }
 0x15d   : > { %1193 = vmatpush3.bf16.xpose.msra.mxu0 (!%p1134_p11), %v1465_v1  ;;  %1208 = vmatprep.mubr.msk.bf16.mxu0 (!%p1134_p11), %vm1848_vm0, %v1847_v2  ;;  %v1468_v8 = vld [vmem:[%s2437_s0 + $0x18] sm:$0xff] (!%p1134_p11)   ;;  %v1470_v10 = vld [vmem:[%s2437_s0 + $0x20] sm:$0xff] (!%p1134_p11)   ;;  %v1472_v12 = vld [vmem:[%s2437_s0 + $0x28] sm:$0xff] (!%p1134_p11)   ;;  %v893_v29 = vand.u32 (!%p1134_p11), 127, %v892_v28 }
 0x15e   : > { %1194 = vmatprep.subr.bf16.mxu0 (!%p1134_p11), %v1847_v2  ;;  %1228 = vmatprep.mubr.msk.bf16.mxu1 (!%p1134_p11), %vm1848_vm0, %v1847_v2  ;;  %v1475_v9 = vld [vmem:[%s2444_s15 + $0x18] sm:$0xff] (!%p1134_p11)   ;;  %v1477_v11 = vld [vmem:[%s2444_s15 + $0x20] sm:$0xff] (!%p1134_p11)   ;;  %v1478_v13 = vld [vmem:[%s2444_s15 + $0x28] sm:$0xff] (!%p1134_p11)  }
 0x15f   : > { %1213 = vmatpush3.bf16.xpose.msra.mxu1 (!%p1134_p11), %v1469_v3  ;;  %v1474_v14 = vld [vmem:[%s2437_s0 + $0x30] sm:$0xff] (!%p1134_p11)   ;;  %v1476_v16 = vld [vmem:[%s2437_s0 + $0x38] sm:$0xff] (!%p1134_p11)   ;;  %v1481_v20 = vld [vmem:[%s2451_s3] sm:$0xff] (!%p1134_p11)  }
 0x160   : > { %1214 = vmatprep.subr.bf16.mxu1 (!%p1134_p11), %v1847_v2  ;;  %v1479_v15 = vld [vmem:[%s2444_s15 + $0x30] sm:$0xff] (!%p1134_p11)   ;;  %v1480_v18 = vld [vmem:[%s2444_s15 + $0x38] sm:$0xff] (!%p1134_p11)   ;;  %v1482_v21 = vld [vmem:[%s2451_s3 + $0x8] sm:$0xff] (!%p1134_p11)  }
 0x161   : > { %v561_v17 = vld [vmem:[%s2429_s27] sm:$0xff] (!%p1134_p11)  ;;  %s2767_s27 = sld [smem:[#allocation45_spill]] (!%p1134_p11)  ;;  %v1485_v24 = vld [vmem:[%s2451_s3 + $0x20] sm:$0xff] (!%p1134_p11)   ;;  %v1486_v25 = vld [vmem:[%s2451_s3 + $0x28] sm:$0xff] (!%p1134_p11)   ;;  %s884_s0 = sshra.s32 (!%p1134_p11), %s2766_s1, 7 }
 0x162   : > { %v562_v19 = vpack.c.bf16 (!%p1134_p11), %v561_v17, %v561_v17  ;;  %v1483_v22 = vld [vmem:[%s2451_s3 + $0x10] sm:$0xff] (!%p1134_p11)   ;;  %v1484_v23 = vld [vmem:[%s2451_s3 + $0x18] sm:$0xff] (!%p1134_p11)   ;;  %s889_s28 = sand.u32 (!%p1134_p11), 127, %s2766_s1  ;;  %v902_v51 = vld [vmem:[#allocation2] sm:$0xff] (!%p1134_p11) }
 0x163   : > { %v1487_v26 = vld [vmem:[%s2451_s3 + $0x30] sm:$0xff]   ;;  %v1488_v27 = vld [vmem:[%s2451_s3 + $0x38] sm:$0xff]  }
 0x164   : > { %v896_v30 = vld [vmem:[%s2464_s25] sm:$0xff] }
 0x165   : > { %1195 = vmatpush3.bf16.xpose.msra.mxu0 %v1466_v4 }
 0x166   : > { %1196 = vmatprep.subr.bf16.mxu0 %v1847_v2 }
 0x167   : > { %1215 = vmatpush3.bf16.xpose.msra.mxu1 %v1471_v5  ;;  %s886_s19 = sadd.s32 %s2767_s27, %s884_s0 }
 0x168   : > { %1216 = vmatprep.subr.bf16.mxu1 %v1847_v2  ;;  %s1160_s15 = sshll.u32 %s886_s19, 7 }
 0x169   : > { %s890_s7 = sadd.s32 %s1160_s15, %s889_s28 }
 0x16a   : > { %s891_s13 = sld [smem:[#allocation4 + %s890_s7]] }
 0x16d   : > { %1197 = vmatpush3.bf16.xpose.msra.mxu0 %v1467_v6 }
 0x16e   : > { %1198 = vmatprep.subr.bf16.mxu0 %v1847_v2 }
 0x16f   : > { %1217 = vmatpush3.bf16.xpose.msra.mxu1 %v1473_v7 }
 0x170   : > { %1218 = vmatprep.subr.bf16.mxu1 %v1847_v2  ;;  %v894_v31 = vstv %s891_s13 }
 0x171   : > { %vm895_vm2 = vcmp.eq.s32.totalorder %v893_v29, %v894_v31 }
 0x172   : > { %v897_v32 = vsel %vm895_vm2, %v896_v30, 0.0 }
 0x173   : > { %v899_v33 = vsel %vm898_vm1, %v897_v32, 0.0 }
 0x174   : > { %900 = vadd.xlane.f32.xlu0 %v899_v33 }
 0x175   : > { %1199 = vmatpush3.bf16.xpose.msra.mxu0 %v1468_v8 }
 0x176   : > { %1200 = vmatprep.subr.bf16.mxu0 %v1847_v2 }
 0x177   : > { %1219 = vmatpush3.bf16.xpose.msra.mxu1 %v1475_v9 }
 0x178   : > { %1220 = vmatprep.subr.bf16.mxu1 %v1847_v2 }
 0x17d   : > { %1201 = vmatpush3.bf16.xpose.msra.mxu0 %v1470_v10 }
 0x17e   : > { %1202 = vmatprep.subr.bf16.mxu0 %v1847_v2 }
 0x17f   : > { %1221 = vmatpush3.bf16.xpose.msra.mxu1 %v1477_v11 }
 0x180   : > { %1222 = vmatprep.subr.bf16.mxu1 %v1847_v2 }
 0x185   : > { %1203 = vmatpush3.bf16.xpose.msra.mxu0 %v1472_v12 }
 0x186   : > { %1204 = vmatprep.subr.bf16.mxu0 %v1847_v2 }
 0x187   : > { %1223 = vmatpush3.bf16.xpose.msra.mxu1 %v1478_v13 }
 0x188   : > { %1224 = vmatprep.subr.bf16.mxu1 %v1847_v2 }
 0x18d   : > { %1205 = vmatpush3.bf16.xpose.msra.mxu0 %v1474_v14 }
 0x18e   : > { %1206 = vmatprep.subr.bf16.mxu0 %v1847_v2 }
 0x18f   : > { %1225 = vmatpush3.bf16.xpose.msra.mxu1 %v1479_v15 }
 0x190   : > { %1226 = vmatprep.subr.bf16.mxu1 %v1847_v2 }
 0x195   : > { %1207 = vmatpush3.bf16.xpose.msra.mxu0 %v1476_v16 }
 0x196   : > { %1232 = vmatprep.subr.bf16.mxu0 %v1847_v2 }
 0x197   : > { %1227 = vmatpush3.bf16.xpose.msra.mxu1 %v1480_v18 }
 0x19c   : > { %1209 = vmatmul.mubr.bf16.vlgmr.msra.gmra.mrb[0].mxu0 %v562_v19 }
 0x19d   : > { %1233 = vmatpush3.bf16.xpose.msra.mxu0 %v1481_v20  ;;  %1248 = vmatprep.mubr.msk.bf16.mxu0 %vm1848_vm0, %v1847_v2 }
 0x19e   : > { %1234 = vmatprep.subr.bf16.mxu0 %v1847_v2  ;;  %1229 = vmatmul.mubr.bf16.vlgmr.msra.gmra.mrb[0].mxu1 %v562_v19 }
 0x1a5   : > { %1235 = vmatpush3.bf16.xpose.msra.mxu0 %v1482_v21 }
 0x1a6   : > { %1236 = vmatprep.subr.bf16.mxu0 %v1847_v2 }
 0x1ad   : > { %1237 = vmatpush3.bf16.xpose.msra.mxu0 %v1483_v22 }
 0x1ae   : > { %1238 = vmatprep.subr.bf16.mxu0 %v1847_v2 }
 0x1b5   : > { %1239 = vmatpush3.bf16.xpose.msra.mxu0 %v1484_v23 }
 0x1b6   : > { %1240 = vmatprep.subr.bf16.mxu0 %v1847_v2 }
 0x1bd   : > { %1241 = vmatpush3.bf16.xpose.msra.mxu0 %v1485_v24 }
 0x1be   : > { %1242 = vmatprep.subr.bf16.mxu0 %v1847_v2 }
 0x1c5   : > { %1243 = vmatpush3.bf16.xpose.msra.mxu0 %v1486_v25 }
 0x1c6   : > { %1244 = vmatprep.subr.bf16.mxu0 %v1847_v2 }
 0x1cd   : > { %1245 = vmatpush3.bf16.xpose.msra.mxu0 %v1487_v26 }
 0x1ce   : > { %1246 = vmatprep.subr.bf16.mxu0 %v1847_v2 }
 0x1d5   : > { %1247 = vmatpush3.bf16.xpose.msra.mxu0 %v1488_v27 }
 0x201   : > { %v901_v49 = vpop.xlane.xlu0 %900 }
 0x26f   : > { %v693_v34 = vpop.f32.mrb[0].mxu0 }
 0x270   : > { %v1151_v35 = vmul.f32 -1.442695, %v693_v34  ;;  %v1210_v36 = vpop.f32.mrb[1].mxu0 }
 0x271   : > { %v696_v37 = vpop.f32.mrb[2].mxu0  ;;  %v781_v39 = vpop.f32.mrb[0].mxu1 }
 0x272   : > { %1489 = vpow2.f32 %v1151_v35  ;;  %v1211_v38 = vpop.f32.mrb[3].mxu0  ;;  %v1230_v40 = vpop.f32.mrb[1].mxu1 }
 0x273   : > { %v784_v41 = vpop.f32.mrb[2].mxu1 }
 0x274   : > { %v1231_v42 = vpop.f32.mrb[3].mxu1 }
 0x27c   : > { %v1490_v43 = vpop.eup %1489 }
 0x27d   : > { %v790_v44 = vadd.f32 1.0, %v1490_v43 }
 0x27f   : > { %1491 = vrcp.f32 %v790_v44 }
 0x289   : > { %v1492_v45 = vpop.eup %1491 }
 0x28a   : > { %v793_v46 = vmul.f32 %v1492_v45, %v693_v34 }
 0x28c   : > { %v794_v47 = vmul.f32 %v793_v46, %v781_v39 }
 0x28e   : > { %v795_v48 = vpack.c.bf16 %v794_v47, %v794_v47 }
 0x290   : > { %1249 = vmatmul.mubr.bf16.vlgmr.msra.gmra.mrb[4].mxu0 %v795_v48 }
 0x363   : > { %v878_v50 = vpop.f32.mrb[4].mxu0 }
 0x364   : > { %v903_v52 = vmul.f32 %v901_v49, %v878_v50  ;;  %v1250_v53 = vpop.f32.mrb[5].mxu0 }
 0x365   : > { %v881_v54 = vpop.f32.mrb[6].mxu0 }
 0x366   : > { %v904_v55 = vadd.f32 %v903_v52, %v902_v51  ;;  %v1251_v56 = vpop.f32.mrb[7].mxu0 }
 0x368   : > { %905 = vst [vmem:[#allocation2] sm:$0xff] %v904_v55 }
 0x369 PF: > { %s2768_s12 = sld [smem:[#allocation44_spill]]  ;;  %s2769_s20 = sld [smem:[#allocation43_spill]] }
 0x36f   : > { %p906_p8 = scmp.eq.s32.totalorder %s2768_s12, 15  ;;  %p907_p13 = scmp.eq.s32.totalorder %s2769_s20, 1 }
 0x371   : > { %p908_p12 = pnand %p907_p13, %p906_p8 }
 0x372   : > { %v912_v57 = vld [vmem:[#allocation2] sm:$0xff] (!%p908_p12) }
 0x373   : > { %911 = sbr.rel (%p908_p12) target bundleno = 890 (0x37a), region = 68  ;;  %913 = vst [vmem:[%s2468_s6] sm:$0xff] (!%p908_p12), %v912_v57 }
 0x37a PF: > { %s2770_s3 = sld [smem:[#allocation45_spill]]  ;;  %s2771_s17 = sld [smem:[#allocation52_spill]] }
 0x37b   : > { %s2772_s5 = sld [smem:[#allocation60_spill]]  ;;  %s928_s4 = sshll.u32 %s2468_s6, 4  ;;  %s929_s4 = int_to_ptr.vmem [resolvable:$true] %s928_s4 }
 0x37c   : > { %s915_s25 = scalar_lea.sflag [#allocation8], %s2423_s23  ;;  %s1635_s26 = scalar_lea.vmem %s929_s4, 128 }
 0x37d   : > { %p1636_p7 = scmp.ne.s32.totalorder %s929_s4, %s1635_s26  ;;  %s1849_s21 = smov [#allocation14]  }
 0x37e   : > { %s1639_s22 = sshll.u32 %s1849_s21, 4  ;;  %s1640_s22 = int_to_ptr.vmem [resolvable:$false] %s1639_s22 }
 0x37f   : > { %s1641_s1 = scalar_lea.vmem %s1640_s22, 256  ;;  %p1642_p6 = scmp.lt.s32.totalorder %s929_s4, %s1640_s22 }
 0x380   : > { %s1162_s16 = sshll.u32 %s2770_s3, 7  ;;  %p2773_p1 = scmp.ne.s32.totalorder %s2771_s17, 0 }
 0x381   : > { %s2538_s2 = scalar_lea.hbm %s2772_s5, %s1162_s16  ;;  %p1643_p10 = scmp.lt.s32.totalorder %s1641_s1, %s1635_s26 }
 0x382   : > { %p1637_p4 = pnand %p1636_p7, %p2773_p1 }
 0x383   : > { %p1644_p3 = por %p1643_p10, %p1642_p6 }
 0x384   : > { %p1638_p0 = pneg %p1637_p4 }
 0x386   : > { %p1645_p5 = pnand %p1644_p3, %p1638_p0 }
 0x388   : > { %1648 = shalt.err (!%p1645_p5)
}
 0x389   : > { %s1649_s23 = scalar_lea.hbm %s2538_s2, 128  ;;  %s1653_s0 = scalar_lea.hbm %s2772_s5, 256 }
 0x38a   : > { %p1650_p9 = scmp.ne.s32.totalorder %s2538_s2, %s1649_s23  ;;  %p1654_p8 = scmp.lt.u32.totalorder %s2538_s2, %s2772_s5 }
 0x38b   : > { %p1655_p13 = scmp.lt.u32.totalorder %s1653_s0, %s1649_s23  ;;  %p1657_p7 = scmp.lt.u32.totalorder %s1649_s23, %s2538_s2 }
 0x38c   : > { %p1651_p2 = pnand %p1650_p9, %p2773_p1 }
 0x38d   : > { %p1656_p12 = por %p1655_p13, %p1654_p8 }
 0x38e   : > { %p1652_p11 = pneg %p1651_p2 }
 0x38f   : > { %p1658_p4 = por %p1657_p7, %p1656_p12 }
 0x391   : > { %p1659_p0 = pnand %p1658_p4, %p1652_p11 }
 0x393   : > { %1662 = shalt.err (!%p1659_p0)
}
 0x394   : > { %1272 = dma.vmem_to_hbm [thread:$0]  (%p2773_p1), %s929_s4, 128, %s2538_s2, %s915_s25  }
 0x395 PF: > { %s2774_s15 = sld [smem:[#allocation41_spill]]  ;;  %s2775_s7 = sld [smem:[#allocation53_spill]] }
 0x396   : > { %p1304_p6 = scmp.ge.s32.totalorder %s1835_s9, 2 }
 0x39b   : > { %s940_s13 = sand.u32 1, %s2774_s15   ;;  %p2776_p10 = scmp.ne.s32.totalorder %s2775_s7, 0 }
 0x39c   : > { %s941_s12 = scalar_lea.sflag [#allocation8], %s940_s13 }
 0x39d   : > { %p1300_p3 = pnand %p1304_p6, %p2776_p10 }
 0x39f   : > { %1758 = dma.done.wait (!%p1300_p3), %s941_s12, 128  }
 0x3a0   : > { %1760 = vsyncadd (!%p1300_p3), %s941_s12, 4294967168  ;;  %s37_s9 = sadd.s32 1, %s1835_s9   ;;  %s2778_s0 = sld [smem:[#allocation34_spill]] }
 0x3a1   : > { %p2564_p5 = scmp.ge.s32.totalorder %s37_s9, 66   ;;  %s2779_s1 = sld [smem:[#allocation35_spill]] }
 0x3a2   : > { %s2780_s17 = sld [smem:[#allocation37_spill]]  ;;  %s2781_s18 = sld [smem:[#allocation38_spill]] }
 0x3a3   : > { %s2782_s19 = sld [smem:[#allocation54_spill]]  ;;  %s2784_s21 = sld [smem:[#allocation40_spill]] }
 0x3a4   : > { %s2783_s3 = sld [smem:[#allocation39_spill]]  ;;  %s2785_s22 = sld [smem:[#allocation49_spill]] }
 0x3a5   : > { %s2786_s14 = sld [smem:[#allocation42_spill]]  ;;  %s2787_s25 = sld [smem:[#allocation50_spill]] }
 0x3a6   : > { %s2788_s2 = sld [smem:[#allocation46_spill]]  ;;  %s2789_s4 = sld [smem:[#allocation47_spill]] }
 0x3a7   : > { %s2790_s6 = sld [smem:[#allocation48_spill]]  ;;  %s2791_s16 = smov %s2365_s10 }
 0x3a8   : > { %s2794_s23 = smov %s1803_s24  ;;  %s2796_s26 = smov %s1823_s29 }
 0x3a9   : > { %s2797_s27 = smov %s1827_s30  ;;  %s2798_s28 = smov %s1831_s8 }
 0x3aa   : > { %s2793_s20 = smov %s2783_s3  ;;  %36 = sbr.rel (!%p2564_p5) target bundleno = 40 (0x28), region = 137 }
 0x3ab   : > { %s2795_s24 = smov %s2786_s14 }
 0x3ac   : > { %s2799_s29 = smov %s2788_s2  ;;  %s2800_s30 = smov %s2789_s4 }
 0x3ad   : > { %s2801_s8 = smov %s2790_s6 }
 0x3b1   :  { %946 = vsyncpa [#allocation7], 1 }
 0x3b2   :  { %948 = vsyncpa [#allocation7 + $0x1], 1 }
 0x3b3   :  { %949 = vsyncpa [#allocation10], 1 }
 0x3b4   :  { %951 = vsyncpa [#allocation10 + $0x1], 1 }
 0x3b5   :  { %952 = vsyncpa [#allocation13], 1 }
 0x3b6   :  { %954 = vsyncpa [#allocation13 + $0x1], 1 }
 0x3b7   :  { %955 = vsyncpa [#allocation8], 1 }
 0x3b8   :  { %957 = vsyncpa [#allocation8 + $0x1], 1 }

</bundles_post_ra>
